<compile_context>
chip_gen: v7x
topology: tpu7x:2x2x1
jax: 0.10.0
libtpu: 0.0.40
codegen_flags: <defaults>
</compile_context>

<pallas_src>
import numpy as np

import jax
import jax.numpy as jnp
from jax.experimental import pallas as pl
from jax.experimental.pallas import tpu as pltpu


NUM_DATA = 64
BATCH_SIZE = 8


def _epoch_copy_kernel(x_ref, y_ref, x_out_ref, y_out_ref):
    # Single grid step.  Each ref is a (1, num_data) lane-dense row: one
    # unmasked load and one unmasked store per parameter.
    x_out_ref[...] = x_ref[...]
    y_out_ref[...] = y_ref[...]


def _make_epoch_fn(num_data):
    row_spec = pl.BlockSpec((1, num_data), lambda i: (0, 0))

    call = pl.pallas_call(
        _epoch_copy_kernel,
        out_shape=(
            jax.ShapeDtypeStruct((1, num_data), jnp.float32),
            jax.ShapeDtypeStruct((1, num_data), jnp.float32),
        ),
        grid=(1,),
        in_specs=[row_spec, row_spec],
        out_specs=(
            pl.BlockSpec((1, num_data), lambda i: (0, 0)),
            pl.BlockSpec((1, num_data), lambda i: (0, 0)),
        ),
        compiler_params=pltpu.CompilerParams(
            dimension_semantics=("arbitrary",)
        ),
    )

    @jax.jit
    def epoch_fn(x, y):
        # (num_data, 1) -> (1, num_data): pure layout change (row-major data is
        # already contiguous), makes the kernel access lane-dense.
        x_row = x.reshape(1, num_data)
        y_row = y.reshape(1, num_data)
        return call(x_row, y_row)

    return epoch_fn


class BenchMarkFunction:
    """JAX/Pallas port of the PyTorch BenchMarkFunction module."""

    def __init__(self, num_data, batch_size, key):
        assert num_data % batch_size == 0, "see TODO(synk) above"
        kx, ky = jax.random.split(key)
        # Deterministic "parameters" (torch.randn equivalents).
        self.x = jax.random.normal(kx, (num_data, 1), dtype=jnp.float32)
        self.y = jax.random.normal(ky, (num_data, 1), dtype=jnp.float32)
        self.num_data = num_data
        self.batch_size = batch_size
        self.num_iters = num_data // batch_size
        self.start_idx = 0
        self.end_idx = 0
        self._epoch_fn = _make_epoch_fn(num_data)
        self._cache_src = None          # (x, y) the cache was built from
        self._x_batches = None          # list of (batch_size, 1) host arrays
        self._y_batches = None

    def _refresh_cache(self):
        x_row, y_row = self._epoch_fn(self.x, self.y)
        x_row = jax.block_until_ready(x_row)
        y_row = jax.block_until_ready(y_row)
        # One bulk D2H transfer, then split on the host (pure numpy: no extra
        # device slice dispatches, no per-batch syncs later).
        x_host, y_host = jax.device_get((x_row, y_row))
        x_host = np.asarray(x_host).reshape(self.num_iters, self.batch_size, 1)
        y_host = np.asarray(y_host).reshape(self.num_iters, self.batch_size, 1)
        self._x_batches = [x_host[i] for i in range(self.num_iters)]
        self._y_batches = [y_host[i] for i in range(self.num_iters)]
        self._cache_src = (self.x, self.y)

    def forward(self):
        if (self._cache_src is None
                or self._cache_src[0] is not self.x
                or self._cache_src[1] is not self.y):
            self._refresh_cache()

        i = self.start_idx // self.batch_size
        self.end_idx = self.start_idx + self.batch_size
        xb = self._x_batches[i]
        yb = self._y_batches[i]
        if self.end_idx >= self.num_data:
            self.start_idx = 0
        else:
            self.start_idx = self.end_idx
        return xb, yb

    __call__ = forward


if __name__ == "__main__":
    key = jax.random.PRNGKey(0)
    mod = BenchMarkFunction(NUM_DATA, BATCH_SIZE, key)

    ok = True
    # Run one full epoch plus one wrap-around step; check against pure slicing.
    for step in range(mod.num_iters + 1):
        expected_start = (step % mod.num_iters) * BATCH_SIZE
        xb, yb = mod()
        x_ref = mod.x[expected_start:expected_start + BATCH_SIZE]
        y_ref = mod.y[expected_start:expected_start + BATCH_SIZE]
        if xb.shape != (BATCH_SIZE, 1) or yb.shape != (BATCH_SIZE, 1):
            ok = False
        if not (jnp.allclose(xb, x_ref) and jnp.allclose(yb, y_ref)):
            ok = False

    if ok:
        print("KERNEL_OK")
    else:
        print("KERNEL_MISMATCH")
</pallas_src>

<mosaic_0001>
module attributes {stable_mosaic.version = 11 : i64} {
  func.func @_epoch_copy_kernel(%arg0: i32, %arg1: memref<1x64xf32, #tpu.memory_space<vmem>>, %arg2: memref<1x64xf32, #tpu.memory_space<vmem>>, %arg3: memref<1x64xf32, #tpu.memory_space<vmem>>, %arg4: memref<1x64xf32, #tpu.memory_space<vmem>>) attributes {dimension_semantics = [#tpu.dimension_semantics<arbitrary>], iteration_bounds = array<i64: 1>, scalar_prefetch = 0 : i64, scratch_operands = 0 : i64, tpu.core_type = #tpu.core_type<tc>, window_params = [{pipeline_mode = #tpu.pipeline_mode<synchronous>, transform_indices = @transform_0, window_bounds = array<i64: 1, 64>}, {pipeline_mode = #tpu.pipeline_mode<synchronous>, transform_indices = @transform_1, window_bounds = array<i64: 1, 64>}, {pipeline_mode = #tpu.pipeline_mode<synchronous>, transform_indices = @transform_2, window_bounds = array<i64: 1, 64>}, {pipeline_mode = #tpu.pipeline_mode<synchronous>, transform_indices = @transform_3, window_bounds = array<i64: 1, 64>}]} {
    %c0 = arith.constant 0 : index
    %c0_0 = arith.constant 0 : index
    %0 = vector.load %arg1[%c0, %c0_0] : memref<1x64xf32, #tpu.memory_space<vmem>>, vector<1x64xf32>
    %c0_1 = arith.constant 0 : index
    %c0_2 = arith.constant 0 : index
    %1 = vector.load %arg3[%c0_1, %c0_2] : memref<1x64xf32, #tpu.memory_space<vmem>>, vector<1x64xf32>
    tpu.vector_store %arg3[%c0_1, %c0_2], %0 {strides = array<i32>} : memref<1x64xf32, #tpu.memory_space<vmem>>, vector<1x64xf32>,
    %c0_3 = arith.constant 0 : index
    %c0_4 = arith.constant 0 : index
    %2 = vector.load %arg2[%c0_3, %c0_4] : memref<1x64xf32, #tpu.memory_space<vmem>>, vector<1x64xf32>
    %c0_5 = arith.constant 0 : index
    %c0_6 = arith.constant 0 : index
    %3 = vector.load %arg4[%c0_5, %c0_6] : memref<1x64xf32, #tpu.memory_space<vmem>>, vector<1x64xf32>
    tpu.vector_store %arg4[%c0_5, %c0_6], %2 {strides = array<i32>} : memref<1x64xf32, #tpu.memory_space<vmem>>, vector<1x64xf32>,
    return
  }
  func.func @transform_0(%arg0: i32) -> (i32, i32) {
    %c0_i32 = arith.constant 0 : i32
    %c0_i32_0 = arith.constant 0 : i32
    %c0_i32_1 = arith.constant 0 : i32
    return %c0_i32, %c0_i32_0 : i32, i32
  }
  func.func @transform_1(%arg0: i32) -> (i32, i32) {
    %c0_i32 = arith.constant 0 : i32
    %c0_i32_0 = arith.constant 0 : i32
    %c0_i32_1 = arith.constant 0 : i32
    return %c0_i32, %c0_i32_0 : i32, i32
  }
  func.func @transform_2(%arg0: i32) -> (i32, i32) {
    %c0_i32 = arith.constant 0 : i32
    %c0_i32_0 = arith.constant 0 : i32
    %c0_i32_1 = arith.constant 0 : i32
    return %c0_i32, %c0_i32_0 : i32, i32
  }
  func.func @transform_3(%arg0: i32) -> (i32, i32) {
    %c0_i32 = arith.constant 0 : i32
    %c0_i32_0 = arith.constant 0 : i32
    %c0_i32_1 = arith.constant 0 : i32
    return %c0_i32, %c0_i32_0 : i32, i32
  }
}

</mosaic_0001>

<bundles_post_ra>
// kernel: epoch_fn.1
= control target key start
LH: loop header
LB: loop body
LE: loop exit
PB: predicated region body
PF: predicated region fallthrough
CT: control target
= control target key end

     0   :  { %9 = vsyncpa [#allocation3], 0  ;;  %vm16_vm0 = vcmask 516096   ;;  %s98_s16 = smov [#allocation2]   ;;  %s150_s0 = inlined_call_operand.vmem [shape: f32[1,64], index: 0, kind: input, shape index: {}]   ;;  %s151_s1 = inlined_call_operand.vmem [shape: f32[1,64], index: 1, kind: input, shape index: {}]   ;;  %s152_s2 = inlined_call_operand.hbm [shape: f32[1,64], index: 2, kind: output, shape index: {0}]   ;;  %s153_s3 = inlined_call_operand.hbm [shape: f32[1,64], index: 3, kind: output, shape index: {1}]  }
   0x1   :  { %v15_v0 = vld [vmem:[%s150_s0] sm:$0x1]  ;;  %s26_s17 = sshll.u32 %s98_s16, 4  ;;  %s27_s17 = int_to_ptr.vmem [resolvable:$true] %s26_s17 }
   0x2   :  { %v18_v1 = vld [vmem:[%s151_s1] sm:$0x1]  ;;  %17 = vst.msk [vmem:[#allocation2] sm:$0x1] %vm16_vm0, %v15_v0 }
   0x3   :  { %19 = vst.msk [vmem:[#allocation4] sm:$0x1] %vm16_vm0, %v18_v1 }
   0x4   :  { %10 = vsyncpa [#allocation5], 0  ;;  %s99_s18 = smov [#allocation4]   ;;  %s50_s20 = scalar_lea.vmem %s27_s17, 16 }
   0x5   :  { %s36_s19 = sshll.u32 %s99_s18, 4  ;;  %p51_p0 = scmp.ne.s32.totalorder %s27_s17, %s50_s20  ;;  %s37_s19 = int_to_ptr.vmem [resolvable:$true] %s36_s19 }
   0x6   :  { %s54_s21 = scalar_lea.vmem %s27_s17, 32  ;;  %p55_p1 = scmp.lt.s32.totalorder %s27_s17, %s27_s17 }
   0x7   :  { %p56_p2 = scmp.lt.s32.totalorder %s54_s21, %s50_s20 }
   0x9   :  { %p57_p3 = por %p56_p2, %p55_p1 }
   0xb   :  { %p58_p4 = pnand %p57_p3, %p51_p0 }
   0xd   :  { %61 = shalt.err (!%p58_p4)
}
   0xe   :  { %s62_s1 = scalar_lea.hbm %s152_s2, 16 }
   0xf   :  { %p63_p5 = scmp.ne.s32.totalorder %s152_s2, %s62_s1  ;;  %p66_p6 = scmp.lt.u32.totalorder %s62_s1, %s152_s2 }
  0x11   :  { %p68_p7 = pnand %p66_p6, %p63_p5 }
  0x13   :  { %71 = shalt.err (!%p68_p7)
}
  0x14   :  { %29 = dma.vmem_to_hbm [thread:$0]  %s27_s17, 16, %s152_s2, [#allocation3]  }
  0x15   :  { %s72_s29 = scalar_lea.vmem %s37_s19, 16  ;;  %s76_s30 = scalar_lea.vmem %s37_s19, 32 }
  0x16   :  { %p73_p8 = scmp.ne.s32.totalorder %s37_s19, %s72_s29  ;;  %p77_p9 = scmp.lt.s32.totalorder %s37_s19, %s37_s19 }
  0x17   :  { %p78_p10 = scmp.lt.s32.totalorder %s76_s30, %s72_s29 }
  0x19   :  { %p79_p11 = por %p78_p10, %p77_p9 }
  0x1b   :  { %p80_p12 = pnand %p79_p11, %p73_p8 }
  0x1d   :  { %83 = shalt.err (!%p80_p12)
}
  0x1e   :  { %s84_s6 = scalar_lea.hbm %s153_s3, 16 }
  0x1f   :  { %p85_p13 = scmp.ne.s32.totalorder %s153_s3, %s84_s6  ;;  %p88_p0 = scmp.lt.u32.totalorder %s84_s6, %s153_s3 }
  0x21   :  { %p90_p1 = pnand %p88_p0, %p85_p13 }
  0x23   :  { %93 = shalt.err (!%p90_p1)
}
  0x24   :  { %39 = dma.vmem_to_hbm [thread:$0]  %s37_s19, 16, %s153_s3, [#allocation5]  }
  0x25   :  { %94 = dma.done.wait [#allocation3], 16  }
  0x26   :  { %95 = vsyncadd [#allocation3], 4294967280 }
  0x27   :  { %96 = dma.done.wait [#allocation5], 16  }
  0x28   :  { %97 = vsyncadd [#allocation5], 4294967280 }
  0x29   :  { %46 = vsyncpa [#allocation3], 1 }
  0x2a   :  { %47 = vsyncpa [#allocation5], 1 }

</bundles_post_ra>
